<compile_context>
chip_gen: v6e
topology: v6e:2x2x1
jax: 0.10.0
libtpu: 0.0.40
codegen_flags: <defaults>
</compile_context>

<pallas_src>
import jax
import jax.numpy as jnp
from jax.experimental import pallas as pl
from jax.experimental.pallas import tpu as pltpu


def _ss_net_kernel(old_ref, obs_ref, w_old_ref, w_obs_ref, b1_ref, w2_ref,
                   b2_ref, out_ref):
    # Layer 1: two K=4 MXU dots into the padded 128-lane feature space
    # (cols 0..14 = h_old, 15..29 = h_obs, 30..127 = zero padding), bias row
    # added on the VPU, then ReLU.
    h = (jnp.dot(old_ref[...], w_old_ref[...], preferred_element_type=jnp.float32)
         + jnp.dot(obs_ref[...], w_obs_ref[...], preferred_element_type=jnp.float32)
         + b1_ref[...])                                        # (B, 128)
    h = jnp.maximum(h, 0.0)

    # F.normalize(concat, p=2, dim=0): per-column L2 norm over the batch.
    # rsqrt(max(sumsq, eps^2)) == 1 / max(sqrt(sumsq), eps)  (eps = 1e-12).
    sumsq = jnp.sum(h * h, axis=0, keepdims=True)              # (1, 128) XLU
    inv = jax.lax.rsqrt(jnp.maximum(sumsq, jnp.float32(1e-24)))  # EUP

    # Fold the inverse norm into the layer-2 weight: padding cols of w2 are 0,
    # so the garbage inv of zero columns never contaminates the result.
    w2_scaled = w2_ref[...] * inv                              # (1, 128)

    # Layer 2 (30 -> 1) on the VPU/XLU: broadcast-mul + lane reduce (MXU idle).
    z = jnp.sum(h * w2_scaled, axis=-1, keepdims=True) + b2_ref[0, 0]  # (B, 1)
    out_ref[...] = jax.nn.sigmoid(z)


def ss_net_forward(old_obs, obs, w_old, w_obs, b1_row, w2_row, b2):
    """old_obs, obs: (B, 4) float32.  Packed params from pack_params()."""
    B = obs.shape[0]
    return pl.pallas_call(
        _ss_net_kernel,
        out_shape=jax.ShapeDtypeStruct((B, 1), jnp.float32),
        grid=(),
        in_specs=[
            pl.BlockSpec(old_obs.shape, lambda: (0, 0)),
            pl.BlockSpec(obs.shape, lambda: (0, 0)),
            pl.BlockSpec(w_old.shape, lambda: (0, 0)),
            pl.BlockSpec(w_obs.shape, lambda: (0, 0)),
            pl.BlockSpec(b1_row.shape, lambda: (0, 0)),
            pl.BlockSpec(w2_row.shape, lambda: (0, 0)),
            pl.BlockSpec(memory_space=pltpu.MemorySpace.SMEM),   # scalar b2
        ],
        out_specs=pl.BlockSpec((B, 1), lambda: (0, 0)),
    )(old_obs.astype(jnp.float32), obs.astype(jnp.float32),
      w_old, w_obs, b1_row, w2_row, b2)


def init_params(key):
    """Synthetic init mirroring the PyTorch module's parameter shapes.

    fanin_init gives U[1/sqrt(fan), 1) for layer 1.  The literal module init
    for Linear(30,1) degenerates to constant 1.0 (fanin = size[0] = 1); here w2
    is drawn randomly instead purely so the numeric self-check is sensitive to
    column-order bugs.  The kernel is agnostic to parameter values.
    """
    k1, k2, k3, k4 = jax.random.split(key, 4)

    # Linear(4, 15)
    v1 = 1.0 / jnp.sqrt(15.0)
    w1 = jax.random.uniform(k1, (15, 4), jnp.float32, minval=v1, maxval=1.0)
    b1 = jax.random.uniform(k2, (15,), jnp.float32, minval=-0.5, maxval=0.5)

    # Linear(30, 1)
    w2 = jax.random.uniform(k3, (1, 30), jnp.float32, minval=-0.5, maxval=0.5)
    b2 = jax.random.uniform(k4, (1,), jnp.float32,
                            minval=-1.0 / jnp.sqrt(30.0),
                            maxval=1.0 / jnp.sqrt(30.0))
    return w1, b1, w2, b2


def pack_params(w1, b1, w2, b2):
    """Build lane-dense kernel parameters (done once, host-side).

    Keeps the weight padded to exactly 128 lanes (one 128-wide MXU tile on all
    generations); no point widening to 256 — this kernel is nowhere near
    MXU-bound.
    """
    w1_t = jnp.transpose(w1).astype(jnp.float32)               # (4, 15)

    # old_obs contributes to concat columns 0..14, obs to columns 15..29.
    w_old = jnp.zeros((4, 128), jnp.float32).at[:, 0:15].set(w1_t)
    w_obs = jnp.zeros((4, 128), jnp.float32).at[:, 15:30].set(w1_t)

    # Layer-1 bias as a single (1, 128) row (applied to both halves).
    b1_row = (jnp.zeros((1, 128), jnp.float32)
              .at[0, 0:15].set(b1)
              .at[0, 15:30].set(b1))

    # Layer-2 weight as a zero-padded lane row (matches concat order [old, obs]).
    w2_row = jnp.zeros((1, 128), jnp.float32).at[0, 0:30].set(w2[0, :])

    b2_smem = jnp.reshape(b2, (1, 1)).astype(jnp.float32)
    return w_old, w_obs, b1_row, w2_row, b2_smem


def reference_forward(old_obs, obs, w1, b1, w2, b2):
    """Pure-JAX reference of the PyTorch forward (unfused params)."""
    h_obs = jax.nn.relu(obs @ w1.T + b1)
    h_old = jax.nn.relu(old_obs @ w1.T + b1)
    concat = jnp.concatenate([h_old, h_obs], axis=-1)          # (B, 30)
    norm = jnp.maximum(
        jnp.sqrt(jnp.sum(concat * concat, axis=0, keepdims=True)), 1e-12)
    concat = concat / norm
    return jax.nn.sigmoid(concat @ w2.T + b2)                  # (B, 1)


if __name__ == "__main__":
    key = jax.random.PRNGKey(0)
    kp, ko, kn = jax.random.split(key, 3)

    B = 8  # small batch
    old_obs = jax.random.normal(ko, (B, 4), jnp.float32)
    obs = jax.random.normal(kn, (B, 4), jnp.float32)

    w1, b1, w2, b2 = init_params(kp)
    packed = pack_params(w1, b1, w2, b2)

    p_rev = ss_net_forward(old_obs, obs, *packed)
    p_rev = jax.block_until_ready(p_rev)

    p_ref = reference_forward(old_obs, obs, w1, b1, w2, b2)
    assert p_rev.shape == (B, 1)
    assert jnp.allclose(p_rev, p_ref, atol=1e-5, rtol=1e-5)

    print("KERNEL_OK")
</pallas_src>

<mosaic_0001>
module attributes {stable_mosaic.version = 11 : i64} {
  func.func @_ss_net_kernel(%arg0: memref<8x4xf32, #tpu.memory_space<vmem>>, %arg1: memref<8x4xf32, #tpu.memory_space<vmem>>, %arg2: memref<4x128xf32, #tpu.memory_space<vmem>>, %arg3: memref<4x128xf32, #tpu.memory_space<vmem>>, %arg4: memref<1x128xf32, #tpu.memory_space<vmem>>, %arg5: memref<1x128xf32, #tpu.memory_space<vmem>>, %arg6: memref<1x1xf32, #tpu.memory_space<smem>>, %arg7: memref<8x1xf32, #tpu.memory_space<vmem>>) attributes {dimension_semantics = [], scalar_prefetch = 0 : i64, scratch_operands = 0 : i64, tpu.core_type = #tpu.core_type<tc>} {
    %c0 = arith.constant 0 : index
    %c0_0 = arith.constant 0 : index
    %0 = vector.load %arg0[%c0, %c0_0] : memref<8x4xf32, #tpu.memory_space<vmem>>, vector<8x4xf32>
    %c0_1 = arith.constant 0 : index
    %c0_2 = arith.constant 0 : index
    %1 = vector.load %arg2[%c0_1, %c0_2] : memref<4x128xf32, #tpu.memory_space<vmem>>, vector<4x128xf32>
    %cst = arith.constant dense<0.000000e+00> : vector<8x128xf32>
    %2 = tpu.matmul %0, %1, %cst {dimension_numbers = #tpu.dot_dimension_numbers<[1], [0], [0], [1], [0, 0, 1, 1], [], []>} : vector<8x4xf32>, vector<4x128xf32>, vector<8x128xf32> -> vector<8x128xf32>
    %c0_3 = arith.constant 0 : index
    %c0_4 = arith.constant 0 : index
    %3 = vector.load %arg1[%c0_3, %c0_4] : memref<8x4xf32, #tpu.memory_space<vmem>>, vector<8x4xf32>
    %c0_5 = arith.constant 0 : index
    %c0_6 = arith.constant 0 : index
    %4 = vector.load %arg3[%c0_5, %c0_6] : memref<4x128xf32, #tpu.memory_space<vmem>>, vector<4x128xf32>
    %cst_7 = arith.constant dense<0.000000e+00> : vector<8x128xf32>
    %5 = tpu.matmul %3, %4, %cst_7 {dimension_numbers = #tpu.dot_dimension_numbers<[1], [0], [0], [1], [0, 0, 1, 1], [], []>} : vector<8x4xf32>, vector<4x128xf32>, vector<8x128xf32> -> vector<8x128xf32>
    %6 = arith.addf %2, %5 : vector<8x128xf32>
    %c0_8 = arith.constant 0 : index
    %c0_9 = arith.constant 0 : index
    %7 = vector.load %arg4[%c0_8, %c0_9] : memref<1x128xf32, #tpu.memory_space<vmem>>, vector<1x128xf32>
    %8 = vector.broadcast %7 : vector<1x128xf32> to vector<8x128xf32>
    %9 = arith.addf %6, %8 : vector<8x128xf32>
    %cst_10 = arith.constant 0.000000e+00 : f32
    %10 = vector.broadcast %cst_10 : f32 to vector<8x128xf32>
    %11 = arith.maximumf %9, %10 : vector<8x128xf32>
    %12 = arith.mulf %11, %11 : vector<8x128xf32>
    %cst_11 = arith.constant dense<0.000000e+00> : vector<128xf32>
    %13 = vector.multi_reduction <add>, %12, %cst_11 [0] : vector<8x128xf32> to vector<128xf32>
    %14 = vector.shape_cast %13 : vector<128xf32> to vector<1x128xf32>
    %cst_12 = arith.constant 1.000000e-24 : f32
    %15 = vector.broadcast %cst_12 : f32 to vector<1x128xf32>
    %16 = arith.maximumf %14, %15 : vector<1x128xf32>
    %17 = math.rsqrt %16 : vector<1x128xf32>
    %c0_13 = arith.constant 0 : index
    %c0_14 = arith.constant 0 : index
    %18 = vector.load %arg5[%c0_13, %c0_14] : memref<1x128xf32, #tpu.memory_space<vmem>>, vector<1x128xf32>
    %19 = arith.mulf %18, %17 : vector<1x128xf32>
    %20 = vector.broadcast %19 : vector<1x128xf32> to vector<8x128xf32>
    %21 = arith.mulf %11, %20 : vector<8x128xf32>
    %cst_15 = arith.constant dense<0.000000e+00> : vector<8xf32>
    %22 = vector.multi_reduction <add>, %21, %cst_15 [1] : vector<8x128xf32> to vector<8xf32>
    %23 = vector.shape_cast %22 : vector<8xf32> to vector<8x1xf32>
    %c0_16 = arith.constant 0 : index
    %c0_17 = arith.constant 0 : index
    %24 = memref.load %arg6[%c0_16, %c0_17] : memref<1x1xf32, #tpu.memory_space<smem>>
    %25 = vector.broadcast %24 : f32 to vector<8x1xf32>
    %26 = arith.addf %23, %25 : vector<8x1xf32>
    %27 = arith.negf %26 : vector<8x1xf32>
    %28 = math.exp %27 : vector<8x1xf32>
    %cst_18 = arith.constant 1.000000e+00 : f32
    %29 = vector.broadcast %cst_18 : f32 to vector<8x1xf32>
    %30 = arith.addf %29, %28 : vector<8x1xf32>
    %31 = arith.divf %29, %30 : vector<8x1xf32>
    %c0_19 = arith.constant 0 : index
    %c0_20 = arith.constant 0 : index
    %32 = vector.load %arg7[%c0_19, %c0_20] : memref<8x1xf32, #tpu.memory_space<vmem>>, vector<8x1xf32>
    tpu.vector_store %arg7[%c0_19, %c0_20], %31 {strides = array<i32>} : memref<8x1xf32, #tpu.memory_space<vmem>>, vector<8x1xf32>,
    return
  }
}

</mosaic_0001>

<bundles_post_ra>
// kernel: tpu_custom_call.1
= control target key start
LH: loop header
LB: loop body
LE: loop exit
PB: predicated region body
PF: predicated region fallthrough
CT: control target
= control target key end

     0   :  { %vm35_vm0 = vcmask 1043456   ;;  %v257_v0 = vmov 0.0   ;;  %vm31_vm1 = vcmask 31744   ;;  %vm258_vm2 = vmmov 0   ;;  %s323_s3 = inlined_call_operand.vmem [shape: f32[4,128], index: 3, kind: input, shape index: {}]   ;;  %s324_s2 = inlined_call_operand.vmem [shape: f32[4,128], index: 2, kind: input, shape index: {}]   ;;  %s325_s1 = inlined_call_operand.vmem [shape: f32[8,4], index: 1, kind: input, shape index: {}]   ;;  %s326_s0 = inlined_call_operand.vmem [shape: f32[8,4], index: 0, kind: input, shape index: {}]   ;;  %s327_s4 = inlined_call_operand.vmem [shape: f32[1,128], index: 4, kind: input, shape index: {}]   ;;  %s328_s5 = inlined_call_operand.vmem [shape: f32[1,128], index: 5, kind: input, shape index: {}]   ;;  %s329_s6 = inlined_call_operand.<no memory space> [shape: f32[1,1], index: 6, kind: input, shape index: {}]   ;;  %s330_s7 = inlined_call_operand.vmem [shape: f32[8,1], index: 7, kind: output, shape index: {}]  }
   0x1   :  { %239 = vmatprep.subr.mxu0 %v257_v0  ;;  %244 = vmatprep.subr.mxu1 %v257_v0  ;;  %v30_v1 = vld [vmem:[%s323_s3] sm:$0xf]  ;;  %v206_v21 = vlaneseq  ;;  %v215_v29 = vstv %s329_s6  ;;  %vm223_vm3 = vcmask 7168  }
   0x2   :  { %v28_v2 = vld [vmem:[%s324_s2] sm:$0xf]  ;;  %240 = vmatpush3.msk.msra.mxu0 %vm35_vm0, %v30_v1  ;;  %241 = vmatprep.mubr.msk.f32.mxu0 %vm258_vm2, %v257_v0 }
   0x3   :  { %v29_v3 = vld [vmem:[%s325_s1] sm:$0xff]  ;;  %245 = vmatpush3.msk.msra.mxu1 %vm35_vm0, %v28_v2  ;;  %246 = vmatprep.mubr.msk.f32.mxu1 %vm258_vm2, %v257_v0  ;;  %v207_v22 = vshrl.u32 %v206_v21, 7 }
   0x4   :  { %v27_v4 = vld [vmem:[%s326_s0] sm:$0xff]  ;;  %242 = vmatmul.mubr.msk.f32.vlgmr.msra.gmra.mxu0 %vm31_vm1, %v29_v3 }
   0x5   :  { %247 = vmatmul.mubr.msk.f32.vlgmr.msra.gmra.mxu1 %vm31_vm1, %v27_v4  ;;  %v233_v7 = vld [vmem:[%s327_s4] ss:$0 sm:$0xff]  ;;  %v208_v24 = vsub.s32 0, %v207_v22 }
   0x6   :  { %v203_v23 = vld [vmem:[%s328_s5] sm:$0x1] }
  0xc4   :  { %v105_v5 = vpop.f32.mrf.mxu0 }
  0xc5   :  { %v181_v6 = vpop.f32.mrf.mxu1 }
  0xc6   :  { %v182_v8 = vadd.f32 %v181_v6, %v105_v5  ;;  %v243_v9 = vpop.f32.mrf.mxu0 }
  0xc7   :  { %v248_v10 = vpop.f32.mrf.mxu1 }
  0xc8   :  { %v192_v11 = vadd.f32 %v233_v7, %v182_v8 }
  0xca   :  { %v193_v12 = vmax.f32 %v192_v11, 0.0 }
  0xcc   :  { %v194_v13 = vmul.f32 %v193_v12, %v193_v12 }
  0xce   :  { %v195_v14 = vrot.slane %v194_v13, 4 }
  0xd0   :  { %v196_v15 = vadd.f32 %v195_v14, %v194_v13 }
  0xd2   :  { %v197_v16 = vrot.slane %v196_v15, 2 }
  0xd4   :  { %v198_v17 = vadd.f32 %v197_v16, %v196_v15 }
  0xd6   :  { %v199_v18 = vrot.slane %v198_v17, 1 }
  0xd8   :  { %v200_v19 = vadd.f32 %v199_v18, %v198_v17 }
  0xda   :  { %v201_v20 = vmax.f32 %v200_v19, 1e-24 }
  0xdc   :  { %251 = vrsqrt.f32 %v201_v20 }
  0xe9   :  { %v252_v25 = vpop.eup %251 }
  0xea   :  { %v204_v26 = vmul.f32 %v252_v25, %v203_v23 }
  0xec   :  { %v209_v27 = vrot.slane %v204_v26, %v208_v24 }
  0xee   :  { %v211_v28 = vmul.f32 %v209_v27, %v193_v12 }
  0xf0   :  { %212 = vadd.xlane.f32.xlu0 %v211_v28 }
 0x179   :  { %v213_v30 = vpop.xlane.xlu0 %212 }
 0x17a   :  { %v216_v31 = vadd.f32 %v215_v29, %v213_v30 }
 0x17c   :  { %v234_v32 = vmul.f32 -1.442695, %v216_v31 }
 0x17e   :  { %253 = vpow2.f32 %v234_v32 }
 0x18b   :  { %v254_v33 = vpop.eup %253 }
 0x18c   :  { %v220_v34 = vadd.f32 1.0, %v254_v33 }
 0x18e   :  { %255 = vrcp.f32 %v220_v34 }
 0x19b   :  { %v256_v35 = vpop.eup %255 }
 0x19c   :  { %224 = vst.msk [vmem:[%s330_s7] sm:$0xff] %vm223_vm3, %v256_v35 }

</bundles_post_ra>
